<compile_context>
chip_gen: v7x
topology: tpu7x:2x2x1
jax: 0.10.0
libtpu: 0.0.40
codegen_flags: <defaults>
</compile_context>

<pallas_src>
import functools

import jax
import jax.numpy as jnp
from jax.experimental import pallas as pl
from jax.experimental.pallas import tpu as pltpu


def _round_up(x, m):
    return ((x + m - 1) // m) * m


# ----------------------------- Pallas kernel ------------------------------ #
def _fwd_kernel(seq_ref, w1_ref, b1_ref, w2_ref, b2_ref, o_ref, *, ta, w, e):
    # seq_ref: (L_pad, E)  per-batch embedded sequence (VMEM resident across A tiles)
    # w1_ref : (W*E, HP)   first-layer weights, H zero-padded to 128 (resident)
    # b1_ref : (1, HP)     first-layer bias, zero-padded (f32)
    # w2_ref : (1, HP)     second-layer weights as a row, zero-padded (f32)
    # b2_ref : (1, 1)      scalar bias in SMEM
    # o_ref  : (TA, 1)     narrow probability column (masked stores; ~TA/8 vst)
    hp = w1_ref.shape[1]
    a0 = pl.multiple_of(pl.program_id(1) * ta, 8)

    # Build the window tile implicitly: accumulate W shifted (TA, E) slices of
    # the sequence against the matching (E, HP) row-band of W1 on the MXU.
    acc = jnp.zeros((ta, hp), jnp.float32)
    for k in range(w):                                    # W is small & static
        xk = seq_ref[pl.ds(a0 + k, ta), :]                # (TA, E)
        wk = w1_ref[k * e:(k + 1) * e, :]                 # (E, HP) static slice
        acc = acc + jnp.dot(xk, wk, preferred_element_type=jnp.float32)

    h = jnp.tanh(acc + b1_ref[...])                       # (TA, HP)
    # Second layer: VPU multiply + XLU lane reduction (avoid an N=1 MXU pass).
    logits = jnp.sum(h * w2_ref[...], axis=-1, keepdims=True) + b2_ref[0, 0]
    o_ref[...] = jax.nn.sigmoid(logits)                   # (TA, 1)


def _forward_pallas(seq_pad, w1_pad, b1_pad, w2_row, b2, *, ta, w, e):
    B, L_pad, E = seq_pad.shape
    A_pad = L_pad - (w - 1)
    num_a = A_pad // ta
    HP = w1_pad.shape[1]

    kernel = functools.partial(_fwd_kernel, ta=ta, w=w, e=e)
    out = pl.pallas_call(
        kernel,
        out_shape=jax.ShapeDtypeStruct((B, A_pad, 1), jnp.float32),
        grid_spec=pl.GridSpec(
            grid=(B, num_a),
            in_specs=[
                # Per-batch sequence block; constant in the inner axis so it is
                # DMA'd once per batch row and reused for every A tile.
                pl.BlockSpec((None, L_pad, E), lambda b, j: (b, 0, 0)),
                pl.BlockSpec((w * e, HP), lambda b, j: (0, 0)),   # W1 resident
                pl.BlockSpec((1, HP), lambda b, j: (0, 0)),       # b1 resident
                pl.BlockSpec((1, HP), lambda b, j: (0, 0)),       # w2 row
                pl.BlockSpec(memory_space=pltpu.MemorySpace.SMEM),  # b2 scalar
            ],
            out_specs=pl.BlockSpec((None, ta, 1), lambda b, j: (b, j, 0)),
        ),
        compiler_params=pltpu.CompilerParams(
            dimension_semantics=("parallel", "parallel"),  # rows independent
            vmem_limit_bytes=32 * 1024 * 1024,             # safe on v5e/v6e/v7x
        ),
    )(seq_pad, w1_pad, b1_pad, w2_row, b2)
    return out[..., 0]                                     # (B, A_pad)


# --------------------------- Module equivalent ----------------------------- #
class WordWindowClassifierPallas:
    """JAX/Pallas equivalent of the PyTorch WordWindowClassifier forward."""

    LANE = 128
    TA_MAX = 2048   # row-tile cap; 2048x128 f32 buffers stay far inside VMEM

    def __init__(self, hyperparameters, vocab_size, padding_idx=0, *, key,
                 use_bf16=False):
        self.window_size = hyperparameters["window_size"]
        self.embed_dim = hyperparameters["embed_dim"]
        self.hidden_dim = hyperparameters["hidden_dim"]
        self.full_window = 2 * self.window_size + 1

        D = self.full_window * self.embed_dim
        H = self.hidden_dim
        self.D, self.H = D, H
        self.HP = _round_up(H, self.LANE)
        # bf16 x/W1 (f32 accumulation) is the fast path on v6e/v7x; default off
        # so the 1e-5 f32 reference comparison holds.
        self.compute_dtype = jnp.bfloat16 if use_bf16 else jnp.float32

        k_emb, k_w1, k_b1, k_w2, k_b2 = jax.random.split(key, 5)

        # nn.Embedding: N(0,1) init, row at padding_idx zeroed.
        emb = jax.random.normal(k_emb, (vocab_size, self.embed_dim), jnp.float32)
        emb = emb.at[padding_idx].set(0.0)
        self.embeds = emb

        # nn.Linear: U(-1/sqrt(fan_in), 1/sqrt(fan_in)) for weight and bias.
        lim1 = 1.0 / jnp.sqrt(jnp.float32(D))
        self.w1 = jax.random.uniform(k_w1, (D, H), jnp.float32, -lim1, lim1)
        self.b1 = jax.random.uniform(k_b1, (1, H), jnp.float32, -lim1, lim1)
        lim2 = 1.0 / jnp.sqrt(jnp.float32(H))
        self.w2 = jax.random.uniform(k_w2, (H, 1), jnp.float32, -lim2, lim2)
        self.b2 = jax.random.uniform(k_b2, (1, 1), jnp.float32, -lim2, lim2)

        # Kernel-side parameters. Only H is zero-padded (32 -> 128); the D axis
        # is consumed as W bands of E rows, so no input-lane padding is needed.
        self.w1_pad = (
            jnp.zeros((D, self.HP), jnp.float32).at[:, :H].set(self.w1)
        ).astype(self.compute_dtype)
        self.b1_pad = jnp.zeros((1, self.HP), jnp.float32).at[:, :H].set(self.b1)
        self.w2_row = jnp.zeros((1, self.HP), jnp.float32).at[:, :H].set(self.w2[:, 0])

    def __call__(self, inputs):
        # inputs: (B, L) int32 token ids
        B, L = inputs.shape
        W = self.full_window
        E = self.embed_dim
        A = L - W + 1                      # torch unfold(1, W, 1) length

        # Single embedding gather (no W-times window duplication in HBM).
        seq = self.embeds[inputs].astype(self.compute_dtype)       # (B, L, E)

        # Row-tile over window positions. Keep TA a multiple of 8; when B == 1,
        # split A so the parallel grid still feeds both v7x TensorCores.
        ta = min(self.TA_MAX, _round_up(A, 8))
        if B == 1:
            ta = min(ta, _round_up(-(-A // 2), 8))
        A_pad = _round_up(A, ta)
        # Pad the sequence so every tile's W shifted slices stay in bounds.
        L_pad = A_pad + W - 1
        seq_pad = jnp.zeros((B, L_pad, E), seq.dtype).at[:, :L, :].set(seq)

        # Hot path: window-build + Linear -> Tanh -> (mul+reduce) -> Sigmoid.
        out = _forward_pallas(
            seq_pad, self.w1_pad, self.b1_pad, self.w2_row, self.b2,
            ta=ta, w=W, e=E,
        )                                                           # (B, A_pad)
        return out[:, :A]

    # TODO(synk): predict() in the PyTorch module is host-side string
    # tokenization + thresholding; it has no tensor/Pallas equivalent.


# ------------------------------ reference ---------------------------------- #
def _reference_forward(model, inputs):
    B, L = inputs.shape
    W = model.full_window
    A = L - W + 1
    starts = jnp.arange(A)[:, None] + jnp.arange(W)[None, :]
    tw = inputs[:, starts]
    emb = model.embeds[tw].reshape(B, A, -1)
    h = jnp.tanh(emb @ model.w1 + model.b1[0])
    out = jax.nn.sigmoid(h @ model.w2 + model.b2[0, 0])
    return out.reshape(B, A)


if __name__ == "__main__":
    key = jax.random.PRNGKey(0)
    k_param, k_data = jax.random.split(key)

    vocab_size = 30
    hyperparameters = {
        "window_size": 2,        # full window = 5
        "embed_dim": 16,
        "hidden_dim": 32,
        "freeze_embeddings": False,
        "word_to_idx": {},
        "idx_to_word": {},
    }

    model = WordWindowClassifierPallas(hyperparameters, vocab_size, key=k_param)

    B, L = 2, 8                  # A = 8 - 5 + 1 = 4 windows per row
    inputs = jax.random.randint(k_data, (B, L), 0, vocab_size, dtype=jnp.int32)

    out = model(inputs)
    out = jax.block_until_ready(out)

    ref = _reference_forward(model, inputs)
    assert out.shape == (B, L - 2 * hyperparameters["window_size"])
    assert jnp.allclose(out, ref, atol=1e-5, rtol=1e-5)

    print("KERNEL_OK")
</pallas_src>

<mosaic_0001>
module attributes {stable_mosaic.version = 11 : i64} {
  func.func @_fwd_kernel(%arg0: i32, %arg1: i32, %arg2: memref<1x12x16xf32, #tpu.memory_space<vmem>>, %arg3: memref<80x128xf32, #tpu.memory_space<vmem>>, %arg4: memref<1x128xf32, #tpu.memory_space<vmem>>, %arg5: memref<1x128xf32, #tpu.memory_space<vmem>>, %arg6: memref<1x1xf32, #tpu.memory_space<smem>>, %arg7: memref<1x8x1xf32, #tpu.memory_space<vmem>>) attributes {dimension_semantics = [#tpu.dimension_semantics<parallel>, #tpu.dimension_semantics<parallel>], iteration_bounds = array<i64: 2, 1>, scalar_prefetch = 0 : i64, scratch_operands = 0 : i64, tpu.core_type = #tpu.core_type<tc>, window_params = [{transform_indices = @transform_0, window_bounds = array<i64: 1, 12, 16>}, {pipeline_mode = #tpu.pipeline_mode<synchronous>, transform_indices = @transform_1, window_bounds = array<i64: 80, 128>}, {pipeline_mode = #tpu.pipeline_mode<synchronous>, transform_indices = @transform_2, window_bounds = array<i64: 1, 128>}, {pipeline_mode = #tpu.pipeline_mode<synchronous>, transform_indices = @transform_3, window_bounds = array<i64: 1, 128>}, {transform_indices = @transform_4, window_bounds = array<i64: 1, 1>}, {transform_indices = @transform_5, window_bounds = array<i64: 1, 8, 1>}]} {
    %c8_i32 = arith.constant 8 : i32
    %0 = arith.muli %arg1, %c8_i32 : i32
    %1 = tpu.assume_multiple %0, 8 : i32
    %cst = arith.constant 0.000000e+00 : f32
    %2 = vector.broadcast %cst : f32 to vector<8x128xf32>
    %c0_i32 = arith.constant 0 : i32
    %3 = arith.addi %1, %c0_i32 : i32
    %c0 = arith.constant 0 : index
    %4 = arith.index_cast %3 : i32 to index
    %c0_0 = arith.constant 0 : index
    %5 = vector.load %arg2[%c0, %4, %c0_0] : memref<1x12x16xf32, #tpu.memory_space<vmem>>, vector<1x8x16xf32>
    %6 = vector.shape_cast %5 : vector<1x8x16xf32> to vector<8x16xf32>
    %c0_1 = arith.constant 0 : index
    %c0_2 = arith.constant 0 : index
    %7 = vector.load %arg3[%c0_1, %c0_2] : memref<80x128xf32, #tpu.memory_space<vmem>>, vector<16x128xf32>
    %cst_3 = arith.constant dense<0.000000e+00> : vector<8x128xf32>
    %8 = tpu.matmul %6, %7, %cst_3 {dimension_numbers = #tpu.dot_dimension_numbers<[1], [0], [0], [1], [0, 0, 1, 1], [], []>} : vector<8x16xf32>, vector<16x128xf32>, vector<8x128xf32> -> vector<8x128xf32>
    %9 = arith.addf %2, %8 : vector<8x128xf32>
    %c1_i32 = arith.constant 1 : i32
    %10 = arith.addi %1, %c1_i32 : i32
    %c0_4 = arith.constant 0 : index
    %11 = arith.index_cast %10 : i32 to index
    %c0_5 = arith.constant 0 : index
    %12 = vector.load %arg2[%c0_4, %11, %c0_5] : memref<1x12x16xf32, #tpu.memory_space<vmem>>, vector<1x8x16xf32>
    %13 = vector.shape_cast %12 : vector<1x8x16xf32> to vector<8x16xf32>
    %c16 = arith.constant 16 : index
    %c0_6 = arith.constant 0 : index
    %14 = vector.load %arg3[%c16, %c0_6] : memref<80x128xf32, #tpu.memory_space<vmem>>, vector<16x128xf32>
    %cst_7 = arith.constant dense<0.000000e+00> : vector<8x128xf32>
    %15 = tpu.matmul %13, %14, %cst_7 {dimension_numbers = #tpu.dot_dimension_numbers<[1], [0], [0], [1], [0, 0, 1, 1], [], []>} : vector<8x16xf32>, vector<16x128xf32>, vector<8x128xf32> -> vector<8x128xf32>
    %16 = arith.addf %9, %15 : vector<8x128xf32>
    %c2_i32 = arith.constant 2 : i32
    %17 = arith.addi %1, %c2_i32 : i32
    %c0_8 = arith.constant 0 : index
    %18 = arith.index_cast %17 : i32 to index
    %c0_9 = arith.constant 0 : index
    %19 = vector.load %arg2[%c0_8, %18, %c0_9] : memref<1x12x16xf32, #tpu.memory_space<vmem>>, vector<1x8x16xf32>
    %20 = vector.shape_cast %19 : vector<1x8x16xf32> to vector<8x16xf32>
    %c32 = arith.constant 32 : index
    %c0_10 = arith.constant 0 : index
    %21 = vector.load %arg3[%c32, %c0_10] : memref<80x128xf32, #tpu.memory_space<vmem>>, vector<16x128xf32>
    %cst_11 = arith.constant dense<0.000000e+00> : vector<8x128xf32>
    %22 = tpu.matmul %20, %21, %cst_11 {dimension_numbers = #tpu.dot_dimension_numbers<[1], [0], [0], [1], [0, 0, 1, 1], [], []>} : vector<8x16xf32>, vector<16x128xf32>, vector<8x128xf32> -> vector<8x128xf32>
    %23 = arith.addf %16, %22 : vector<8x128xf32>
    %c3_i32 = arith.constant 3 : i32
    %24 = arith.addi %1, %c3_i32 : i32
    %c0_12 = arith.constant 0 : index
    %25 = arith.index_cast %24 : i32 to index
    %c0_13 = arith.constant 0 : index
    %26 = vector.load %arg2[%c0_12, %25, %c0_13] : memref<1x12x16xf32, #tpu.memory_space<vmem>>, vector<1x8x16xf32>
    %27 = vector.shape_cast %26 : vector<1x8x16xf32> to vector<8x16xf32>
    %c48 = arith.constant 48 : index
    %c0_14 = arith.constant 0 : index
    %28 = vector.load %arg3[%c48, %c0_14] : memref<80x128xf32, #tpu.memory_space<vmem>>, vector<16x128xf32>
    %cst_15 = arith.constant dense<0.000000e+00> : vector<8x128xf32>
    %29 = tpu.matmul %27, %28, %cst_15 {dimension_numbers = #tpu.dot_dimension_numbers<[1], [0], [0], [1], [0, 0, 1, 1], [], []>} : vector<8x16xf32>, vector<16x128xf32>, vector<8x128xf32> -> vector<8x128xf32>
    %30 = arith.addf %23, %29 : vector<8x128xf32>
    %c4_i32 = arith.constant 4 : i32
    %31 = arith.addi %1, %c4_i32 : i32
    %c0_16 = arith.constant 0 : index
    %32 = arith.index_cast %31 : i32 to index
    %c0_17 = arith.constant 0 : index
    %33 = vector.load %arg2[%c0_16, %32, %c0_17] : memref<1x12x16xf32, #tpu.memory_space<vmem>>, vector<1x8x16xf32>
    %34 = vector.shape_cast %33 : vector<1x8x16xf32> to vector<8x16xf32>
    %c64 = arith.constant 64 : index
    %c0_18 = arith.constant 0 : index
    %35 = vector.load %arg3[%c64, %c0_18] : memref<80x128xf32, #tpu.memory_space<vmem>>, vector<16x128xf32>
    %cst_19 = arith.constant dense<0.000000e+00> : vector<8x128xf32>
    %36 = tpu.matmul %34, %35, %cst_19 {dimension_numbers = #tpu.dot_dimension_numbers<[1], [0], [0], [1], [0, 0, 1, 1], [], []>} : vector<8x16xf32>, vector<16x128xf32>, vector<8x128xf32> -> vector<8x128xf32>
    %37 = arith.addf %30, %36 : vector<8x128xf32>
    %c0_20 = arith.constant 0 : index
    %c0_21 = arith.constant 0 : index
    %38 = vector.load %arg4[%c0_20, %c0_21] : memref<1x128xf32, #tpu.memory_space<vmem>>, vector<1x128xf32>
    %39 = vector.broadcast %38 : vector<1x128xf32> to vector<8x128xf32>
    %40 = arith.addf %37, %39 : vector<8x128xf32>
    %41 = math.tanh %40 : vector<8x128xf32>
    %c0_22 = arith.constant 0 : index
    %c0_23 = arith.constant 0 : index
    %42 = vector.load %arg5[%c0_22, %c0_23] : memref<1x128xf32, #tpu.memory_space<vmem>>, vector<1x128xf32>
    %43 = vector.broadcast %42 : vector<1x128xf32> to vector<8x128xf32>
    %44 = arith.mulf %41, %43 : vector<8x128xf32>
    %cst_24 = arith.constant dense<0.000000e+00> : vector<8xf32>
    %45 = vector.multi_reduction <add>, %44, %cst_24 [1] : vector<8x128xf32> to vector<8xf32>
    %46 = vector.shape_cast %45 : vector<8xf32> to vector<8x1xf32>
    %c0_25 = arith.constant 0 : index
    %c0_26 = arith.constant 0 : index
    %47 = memref.load %arg6[%c0_25, %c0_26] : memref<1x1xf32, #tpu.memory_space<smem>>
    %48 = vector.broadcast %47 : f32 to vector<8x1xf32>
    %49 = arith.addf %46, %48 : vector<8x1xf32>
    %50 = arith.negf %49 : vector<8x1xf32>
    %51 = math.exp %50 : vector<8x1xf32>
    %cst_27 = arith.constant 1.000000e+00 : f32
    %52 = vector.broadcast %cst_27 : f32 to vector<8x1xf32>
    %53 = arith.addf %52, %51 : vector<8x1xf32>
    %54 = arith.divf %52, %53 : vector<8x1xf32>
    %c0_28 = arith.constant 0 : index
    %c0_29 = arith.constant 0 : index
    %c0_30 = arith.constant 0 : index
    %55 = vector.load %arg7[%c0_28, %c0_29, %c0_30] : memref<1x8x1xf32, #tpu.memory_space<vmem>>, vector<1x8x1xf32>
    %56 = vector.shape_cast %55 : vector<1x8x1xf32> to vector<8x1xf32>
    %57 = vector.shape_cast %54 : vector<8x1xf32> to vector<1x8x1xf32>
    tpu.vector_store %arg7[%c0_28, %c0_29, %c0_30], %57 {strides = array<i32>} : memref<1x8x1xf32, #tpu.memory_space<vmem>>, vector<1x8x1xf32>,
    return
  }
  func.func @transform_0(%arg0: i32, %arg1: i32) -> (i32, i32, i32) {
    %c0_i32 = arith.constant 0 : i32
    %c0_i32_0 = arith.constant 0 : i32
    %c0_i32_1 = arith.constant 0 : i32
    return %arg0, %c0_i32, %c0_i32_0 : i32, i32, i32
  }
  func.func @transform_1(%arg0: i32, %arg1: i32) -> (i32, i32) {
    %c0_i32 = arith.constant 0 : i32
    %c0_i32_0 = arith.constant 0 : i32
    %c0_i32_1 = arith.constant 0 : i32
    return %c0_i32, %c0_i32_0 : i32, i32
  }
  func.func @transform_2(%arg0: i32, %arg1: i32) -> (i32, i32) {
    %c0_i32 = arith.constant 0 : i32
    %c0_i32_0 = arith.constant 0 : i32
    %c0_i32_1 = arith.constant 0 : i32
    return %c0_i32, %c0_i32_0 : i32, i32
  }
  func.func @transform_3(%arg0: i32, %arg1: i32) -> (i32, i32) {
    %c0_i32 = arith.constant 0 : i32
    %c0_i32_0 = arith.constant 0 : i32
    %c0_i32_1 = arith.constant 0 : i32
    return %c0_i32, %c0_i32_0 : i32, i32
  }
  func.func @transform_4(%arg0: i32, %arg1: i32) -> (i32, i32) {
    %c0_i32 = arith.constant 0 : i32
    %c0_i32_0 = arith.constant 0 : i32
    %c0_i32_1 = arith.constant 0 : i32
    return %c0_i32, %c0_i32_0 : i32, i32
  }
  func.func @transform_5(%arg0: i32, %arg1: i32) -> (i32, i32, i32) {
    %c0_i32 = arith.constant 0 : i32
    %c0_i32_0 = arith.constant 0 : i32
    return %arg0, %arg1, %c0_i32 : i32, i32, i32
  }
}

</mosaic_0001>

<bundles_post_ra>
// kernel: tpu_custom_call.1
= control target key start
LH: loop header
LB: loop body
LE: loop exit
PB: predicated region body
PF: predicated region fallthrough
CT: control target
= control target key end

     0   :  { %s1115_s0 = inlined_call_operand.vmem [shape: f32[2,12,16], index: 0, kind: input, shape index: {}]   ;;  %s1116_s1 = inlined_call_operand.hbm [shape: f32[80,128], index: 1, kind: input, shape index: {}]   ;;  %s1117_s2 = inlined_call_operand.vmem [shape: f32[1,128], index: 2, kind: input, shape index: {}]   ;;  %s1118_s3 = inlined_call_operand.vmem [shape: f32[1,128], index: 3, kind: input, shape index: {}]   ;;  %s1119_s4 = inlined_call_operand.<no memory space> [shape: f32[1,1], index: 4, kind: input, shape index: {}]   ;;  %s1120_s5 = inlined_call_operand.vmem [shape: f32[2,8,1], index: 5, kind: output, shape index: {}]  }
   0x1   :  { %10 = sst [smem:[#allocation2]] %s1119_s4 }
   0x2   :  { %11 = vsyncpa [#allocation4], 0  ;;  %s1012_s20 = smov 0   ;;  %s1014_s21 = smov 0  }
   0x3   :  { %s1016_s22 = smov 0  }
   0x4 LB: > { %s781_s4 = sadd.s32 4294967295, %s971_s22   ;;  %s29_s23 = sadd.s32 1, %s967_s21  ;;  %s971_s22 = sphi %s1016_s22, %s17_s22   ;;  %s967_s21 = sphi %s1014_s21, %s1130_s21   ;;  %s963_s20 = sphi %s1012_s20, %s1129_s20  }
   0x5   : > { %p31_p0 = scmp.ge.s32.totalorder %s29_s23, 2  ;;  %p783_p1 = scmp.ge.s32.totalorder %s971_s22, 1 }
   0x6   : > { %p172_p2 = scmp.lt.s32.totalorder %s971_s22, 3  ;;  %p1037_p4 = scmp.eq.s32.totalorder %s781_s4, 0 }
   0x7   : > { %s1132_s23 = smov (%p31_p0, %s29_s23), 0  ;;  %s973_s26 = smov [#allocation3]  }
   0x8   : > { %p1033_p3 = pnand %p783_p1, %p172_p2  ;;  %s184_s27 = sshll.u32 %s973_s26, 4  ;;  %s185_s27 = int_to_ptr.vmem [resolvable:$true] %s184_s27 }
   0x9   : > { %s1125_s25 = scalar_select %p1037_p4, 1, 0 }
   0xa   : > { %s1124_s24 = scalar_select %p1033_p3, 1, 0 }
   0xb   : > { %p875_p5 = pneg %p1033_p3  ;;  %s917_s6 = scalar_lea.hbm %s1116_s1, 1280 }
   0xc   : > { %p918_p7 = scmp.ne.s32.totalorder %s1116_s1, %s917_s6  ;;  %p924_p11 = scmp.lt.u32.totalorder %s917_s6, %s1116_s1 }
   0xd   : > { %p1045_p6 = pnand %p1037_p4, %p875_p5 }
   0xf   : > { %p919_p8 = pneg %p1045_p6 }
  0x11   : > { %p920_p9 = pnand %p919_p8, %p918_p7 }
  0x13   : > { %p921_p10 = pneg %p920_p9 }
  0x15   : > { %p926_p12 = pnand %p924_p11, %p921_p10 }
  0x17   : > { %929 = shalt.err (!%p926_p12)
}
  0x18   : > { %s930_s11 = scalar_lea.vmem %s185_s27, 1280  ;;  %p938_p2 = scmp.lt.s32.totalorder %s185_s27, %s185_s27 }
  0x19   : > { %p931_p13 = scmp.ne.s32.totalorder %s185_s27, %s930_s11  ;;  %p939_p5 = scmp.lt.s32.totalorder %s930_s11, %s930_s11 }
  0x1b   : > { %p933_p0 = pnand %p931_p13, %p919_p8  ;;  %p940_p4 = por %p939_p5, %p938_p2 }
  0x1d   : > { %p934_p1 = pneg %p933_p0 }
  0x1f   : > { %p941_p3 = pnand %p940_p4, %p934_p1 }
  0x21   : > { %944 = shalt.err (!%p941_p3)
}
  0x22   : > { %s974_s12 = smov 128   ;;  %s975_s13 = smov 8  }
  0x23   : > { %878 = dma.hbm_to_vmem [thread:$0]  (!%p1045_p6), %s1116_s1, 1280, %s185_s27, [#allocation4], %s974_s12, %s974_s12, %s975_s13  }
  0x24   : > { %p1127_p7 = scmp.ne.s32.totalorder %s1124_s24, 0 }
  0x25   : > { %p1128_p9 = scmp.ne.s32.totalorder (!%p1127_p7), %s1125_s25, 0 }
  0x26   : > { %217 = sbr.rel (%p1127_p7) target bundleno = 461 (0x1cd), region = 40 }
  0x2d   : > { %958 = dma.done.wait (%p1128_p9), [#allocation4], 1280  }
  0x2e   : > { %960 = vsyncadd (%p1128_p9), [#allocation4], 4294966016  ;;  %p247_p3 = scmp.lt.s32.totalorder %s963_s20, 1  ;;  %v976_v0 = vmov 0.0|0.0   ;;  %vm977_vm0 = vmmov 0   ;;  %v978_v1 = vmov 0.0  }
  0x2f   : > { %856 = vmatprep.subr.bf16.mxu0 %v976_v0  ;;  %859 = vmatprep.subr.bf16.mxu1 %v976_v0  ;;  %v267_v2 = vld [vmem:[#allocation3 + $0x10] sm:$0xff]  ;;  %v268_v3 = vld [vmem:[#allocation3 + $0x18] sm:$0xff]  ;;  %v262_v4 = vld [vmem:[#allocation3] sm:$0xff]  ;;  %vm269_vm1 = vcmask 130048   ;;  %s672_s27 = sld [smem:[#allocation2]]  ;;  %vm681_vm2 = vcmask 7168  }
  0x30   : > { %825 = vmatprep.mubr.msk.f32.mxu0 %vm977_vm0, %v978_v1  ;;  %s1134_s20 = smov (!%p247_p3, %s963_s20), 1  ;;  %832 = vmatprep.mubr.msk.f32.mxu1 %vm977_vm0, %v978_v1  ;;  %v857_v5 = vpack.c.bf16 %v268_v3, %v267_v2  ;;  %v263_v6 = vld [vmem:[#allocation3 + $0x8] sm:$0xff]  ;;  %v419_v8 = vld [vmem:[#allocation3 + $0x20] sm:$0xff]  ;;  %v498_v10 = vld [vmem:[#allocation3 + $0x30] sm:$0xff] }
  0x31   : > { %s805_s16 = sshll.u32 %s1134_s20, 4  ;;  %v860_v7 = vpack.c.bf16 %v263_v6, %v262_v4  ;;  %v420_v9 = vld [vmem:[#allocation3 + $0x28] sm:$0xff]  ;;  %v499_v13 = vld [vmem:[#allocation3 + $0x38] sm:$0xff]  ;;  %v577_v16 = vld [vmem:[#allocation3 + $0x40] sm:$0xff]  ;;  %s790_s28 = sshll.u32 %s1134_s20, 3 }
  0x32   : > { %s1081_s19 = scalar_lea.vmem %s1115_s0, %s805_s16  ;;  %858 = vmatpush3.bf16.msra.mxu0 %v857_v5  ;;  %v863_v12 = vpack.c.bf16 %v420_v9, %v419_v8  ;;  %v866_v15 = vpack.c.bf16 %v499_v13, %v498_v10  ;;  %v578_v17 = vld [vmem:[#allocation3 + $0x48] sm:$0xff]  ;;  %v800_v34 = vld [vmem:[%s1117_s2] ss:$0 sm:$0xff]  ;;  %s258_s6 = scalar_lea.vmem %s1120_s5, %s790_s28 }
  0x33   : > { %v791_v11 = vld [vmem:[%s1081_s19 + $0x1] sm:$0xff]  ;;  %861 = vmatpush3.bf16.msra.mxu1 %v860_v7  ;;  %862 = vmatprep.subr.bf16.mxu0 %v976_v0  ;;  %v869_v19 = vpack.c.bf16 %v578_v17, %v577_v16  ;;  %v801_v38 = vld [vmem:[%s1118_s3] ss:$0 sm:$0xff] }
  0x34   : > { %v261_v14 = vld [vmem:[%s1081_s19] sm:$0xff]  ;;  %865 = vmatprep.subr.bf16.mxu1 %v976_v0 }
  0x35   : > { %826 = vmatmul.mubr.msk.f32.vlgmr.msra.gmra.mrb[0].mxu0 %vm269_vm1, %v791_v11  ;;  %v794_v18 = vld [vmem:[%s1081_s19 + $0x2] sm:$0xff]  ;;  %v673_v41 = vstv %s672_s27 }
  0x36   : > { %833 = vmatmul.mubr.msk.f32.vlgmr.msra.gmra.mrb[0].mxu1 %vm269_vm1, %v261_v14  ;;  %864 = vmatpush3.bf16.msra.mxu0 %v863_v12  ;;  %v796_v20 = vld [vmem:[%s1081_s19 + $0x3] sm:$0xff] }
  0x37   : > { %839 = vmatprep.mubr.msk.f32.mxu0 %vm977_vm0, %v978_v1  ;;  %867 = vmatpush3.bf16.msra.mxu1 %v866_v15  ;;  %v798_v21 = vld [vmem:[%s1081_s19 + $0x4] sm:$0xff] }
  0x38   : > { %868 = vmatprep.subr.bf16.mxu0 %v976_v0  ;;  %846 = vmatprep.mubr.msk.f32.mxu1 %vm977_vm0, %v978_v1 }
  0x39   : > { %840 = vmatmul.mubr.msk.f32.vlgmr.msra.gmra.mrb[2].mxu0 %vm269_vm1, %v794_v18 }
  0x3a   : > { %870 = vmatpush3.bf16.msra.mxu0 %v869_v19  ;;  %847 = vmatmul.mubr.msk.f32.vlgmr.msra.gmra.mrb[2].mxu1 %vm269_vm1, %v796_v20 }
  0x3b   : > { %853 = vmatprep.mubr.msk.f32.mxu0 %vm977_vm0, %v978_v1 }
  0x3d   : > { %854 = vmatmul.mubr.msk.f32.vlgmr.msra.gmra.mrb[4].mxu0 %vm269_vm1, %v798_v21 }
 0x108   : > { %v339_v22 = vpop.f32.mrb[0].mxu0 }
 0x109   : > { %v827_v23 = vpop.f32.mrb[1].mxu0  ;;  %v412_v24 = vpop.f32.mrb[0].mxu1 }
 0x10a   : > { %v413_v25 = vadd.f32 %v412_v24, %v339_v22  ;;  %v834_v26 = vpop.f32.mrb[1].mxu1 }
 0x10c   : > { %v490_v27 = vpop.f32.mrb[2].mxu0 }
 0x10d   : > { %v494_v28 = vadd.f32 %v490_v27, %v413_v25  ;;  %v841_v29 = vpop.f32.mrb[3].mxu0  ;;  %v569_v30 = vpop.f32.mrb[2].mxu1 }
 0x10e   : > { %v848_v31 = vpop.f32.mrb[3].mxu1 }
 0x10f   : > { %v573_v32 = vadd.f32 %v569_v30, %v494_v28 }
 0x110   : > { %v648_v33 = vpop.f32.mrb[4].mxu0 }
 0x111   : > { %v652_v35 = vadd.f32 %v648_v33, %v573_v32  ;;  %v855_v36 = vpop.f32.mrb[5].mxu0 }
 0x113   : > { %v660_v37 = vadd.f32 %v800_v34, %v652_v35 }
 0x115   : > { %911 = vtanh.f32 %v660_v37 }
 0x11f   : > { %v912_v39 = vpop.eup %911 }
 0x120   : > { %v669_v40 = vmul.f32 %v912_v39, %v801_v38 }
 0x122   : > { %670 = vadd.xlane.f32.xlu0 %v669_v40 }
 0x1af   : > { %v671_v42 = vpop.xlane.xlu0 %670 }
 0x1b0   : > { %v674_v43 = vadd.f32 %v673_v41, %v671_v42 }
 0x1b2   : > { %v802_v44 = vmul.f32 -1.442695, %v674_v43 }
 0x1b4   : > { %913 = vpow2.f32 %v802_v44 }
 0x1be   : > { %v914_v45 = vpop.eup %913 }
 0x1bf   : > { %v678_v46 = vadd.f32 1.0, %v914_v45 }
 0x1c1   : > { %915 = vrcp.f32 %v678_v46 }
 0x1cb   : > { %v916_v47 = vpop.eup %915 }
 0x1cc   : > { %682 = vst.msk [vmem:[%s258_s6] sm:$0xff] %vm681_vm2, %v916_v47 }
 0x1cd PF: > { %s17_s22 = sadd.s32 1, %s971_s22   ;;  %s1129_s20 = smov %s967_s21 }
 0x1ce   : > { %p14_p4 = scmp.ge.s32.totalorder %s17_s22, 4   ;;  %s1130_s21 = smov %s1132_s23 }
 0x1d0   :  { %16 = sbr.rel (!%p14_p4) target bundleno = 4 (0x4), region = 80 }
 0x1d7   :  { %708 = vsyncpa [#allocation4], 1 }
 0x1d8   :  { %710 = vsyncpa [#allocation4 + $0x1], 1 }

</bundles_post_ra>
